<compile_context>
chip_gen: v5e
topology: v5e:2x2
jax: 0.10.0
libtpu: 0.0.40
codegen_flags: <defaults>
</compile_context>

<pallas_src>
import functools

import jax
import jax.numpy as jnp
from jax.experimental import pallas as pl
from jax.experimental.pallas import tpu as pltpu


def _round_up(x, m):
    return ((x + m - 1) // m) * m


def _pick_tile(n, max_tile=512):
    # Lane-dense time tiles: multiples of 128, or a single tile covering the
    # whole (padded) time axis when it is short.
    if n >= max_tile:
        return max_tile
    return _round_up(n, 128)


# -----------------------------------------------------------------------------
# Kernel 1: fused complex filterbank — one (2F x K) matmul on the MXU against a
# (K x tile_t) frame tile, followed by the magnitude/power, emitting the
# PyTorch (B, F, T) layout directly.
#
# layout: frames : (B, K, Tp)   im2col'd audio; K taps on sublanes, frames on lanes
#         w_cat  : (2F, K)      rows [0, F) = real filters, [F, 2F) = imag filters
#         out    : (B, F, Tp)   power (to_db=True) or magnitude (to_db=False)
# grid: (B, Tp // tile_t); weights resident, frame/output tiles stream.
# -----------------------------------------------------------------------------
def _conv_mag_kernel(frames_ref, w_ref, o_ref, *, n_bins, output_power):
    x = frames_ref[0]                                                # (K, tile_t)
    y = jnp.dot(w_ref[...], x, preferred_element_type=jnp.float32)   # (2F, tile_t)
    real = y[:n_bins, :]
    imag = y[n_bins:, :]
    power = real * real + imag * imag
    o_ref[0] = power if output_power else jnp.sqrt(power)


def conv_filterbank(frames, w_cat, *, n_bins, tile_t, output_power):
    B, K, Tp = frames.shape
    F2 = w_cat.shape[0]
    kernel = functools.partial(_conv_mag_kernel, n_bins=n_bins,
                               output_power=output_power)
    return pl.pallas_call(
        kernel,
        out_shape=jax.ShapeDtypeStruct((B, n_bins, Tp), jnp.float32),
        grid=(B, Tp // tile_t),
        in_specs=[
            pl.BlockSpec((1, K, tile_t), lambda b, t: (b, 0, t)),
            pl.BlockSpec((F2, K), lambda b, t: (0, 0)),
        ],
        out_specs=pl.BlockSpec((1, n_bins, tile_t), lambda b, t: (b, 0, t)),
        compiler_params=pltpu.CompilerParams(
            dimension_semantics=("parallel", "parallel")),
    )(frames, w_cat)


# -----------------------------------------------------------------------------
# Kernel 2: elementwise post-processing — power->dB (clamp to top_db, optional
# [0,1] scaling) fused with eval-mode BatchNorm1d, tiled lane-dense over time.
#
# layout: feats  : (B, F, Tp2)  power (to_db=True) or magnitude (else)
#         ref_db : (B, 1, 1)    per-batch dB reference (precomputed in wrapper)
#         bn_*   : (F, 1)       folded BatchNorm scale / shift
# -----------------------------------------------------------------------------
def _postproc_kernel(feats_ref, refdb_ref, scale_ref, shift_ref, o_ref, *,
                     amin, top_db, to_db, db_to_prob, batch_norm):
    x = feats_ref[0]                                     # (F, tile_t)
    if to_db:
        power = jnp.maximum(x, amin * amin)              # x is already power
        db = 10.0 * jnp.log10(power)
        db = jnp.maximum(db - refdb_ref[0], -top_db)     # (1,1) broadcast
        x = (db + top_db) * (1.0 / top_db) if db_to_prob else db
    if batch_norm:
        x = x * scale_ref[...] + shift_ref[...]          # (F,1) broadcast
    o_ref[0] = x


def post_proc(feats, ref_db, bn_scale, bn_shift, *, tile_t, amin, top_db,
              to_db, db_to_prob, batch_norm):
    B, F, Tp = feats.shape
    kernel = functools.partial(
        _postproc_kernel, amin=amin, top_db=top_db, to_db=to_db,
        db_to_prob=db_to_prob, batch_norm=batch_norm)
    return pl.pallas_call(
        kernel,
        out_shape=jax.ShapeDtypeStruct((B, F, Tp), jnp.float32),
        grid=(B, Tp // tile_t),
        in_specs=[
            pl.BlockSpec((1, F, tile_t), lambda b, t: (b, 0, t)),
            pl.BlockSpec((1, 1, 1), lambda b, t: (b, 0, 0)),
            pl.BlockSpec((F, 1), lambda b, t: (0, 0)),
            pl.BlockSpec((F, 1), lambda b, t: (0, 0)),
        ],
        out_specs=pl.BlockSpec((1, F, tile_t), lambda b, t: (b, 0, t)),
        compiler_params=pltpu.CompilerParams(
            dimension_semantics=("parallel", "parallel")),
    )(feats, ref_db, bn_scale, bn_shift)


# -----------------------------------------------------------------------------
# Module wrapper (glue in plain JAX: padding, im2col, max-pool, final slice).
# -----------------------------------------------------------------------------
class LVQTPallas:
    def __init__(self, *, fs=22050, hop_length=16, n_bins=32, kernel_width=32,
                 max_p=1, to_db=True, db_to_prob=True, batch_norm=True,
                 amin=1e-10, top_db=80.0, key=None):
        self.fs = fs
        self.hop_length = hop_length
        self.n_bins = n_bins
        self.kernel_width = kernel_width
        self.max_p = max_p
        self.to_db = to_db
        self.db_to_prob = db_to_prob
        self.batch_norm = batch_norm
        self.amin = amin
        self.top_db = top_db

        key = jax.random.PRNGKey(0) if key is None else key
        kw, _ = jax.random.split(key)
        # random=True branch: 2*n_bins real-valued filters of length kernel_width,
        # kept in the fused (2F, K) layout kernel 1 consumes directly
        # (rows [0, F) = real part, rows [F, 2F) = imaginary part).
        self.w_cat = (jax.random.normal(kw, (2 * n_bins, kernel_width),
                                        jnp.float32)
                      * (1.0 / jnp.sqrt(kernel_width)))

        # Deterministic BatchNorm1d parameters (eval-mode running stats), folded
        # once into a per-channel scale/shift.
        eps = 1e-5
        gamma = 1.0 + 0.01 * jnp.arange(n_bins, dtype=jnp.float32)
        beta = 0.01 * jnp.arange(n_bins, dtype=jnp.float32)
        run_mean = jnp.zeros((n_bins,), jnp.float32)
        run_var = jnp.ones((n_bins,), jnp.float32)
        scale = gamma / jnp.sqrt(run_var + eps)
        shift = beta - run_mean * scale
        self.bn_scale = scale.reshape(n_bins, 1)
        self.bn_shift = shift.reshape(n_bins, 1)

    def pad_audio(self, audio):
        T = audio.shape[-1]
        remaining = self.hop_length - T % self.hop_length
        if remaining != self.hop_length:
            audio = jnp.pad(audio, ((0, 0), (0, 0), (0, remaining)))
        return audio

    def __call__(self, audio):
        # audio: (B, 1, T) float32  -- PyTorch NCW convention.
        audio = self.pad_audio(audio)
        B, _, T = audio.shape
        K = self.kernel_width
        pad = K // 2
        stride = self.hop_length // self.max_p

        # im2col in (B, K, n_frames) layout (glue, not the hot path): frame
        # index on the lane axis so kernel 1 needs no transpose anywhere.
        padded = jnp.pad(audio[:, 0, :], ((0, 0), (pad, pad)))
        n_frames = (T + 2 * pad - K) // stride + 1
        idx = jnp.arange(K)[:, None] + jnp.arange(n_frames)[None, :] * stride
        frames = padded[:, idx]                              # (B, K, n_frames)

        # Pad the time axis to a whole number of lane-dense tiles.
        tile_t = _pick_tile(n_frames)
        Tp = _round_up(n_frames, tile_t)
        frames = jnp.pad(frames, ((0, 0), (0, 0), (0, Tp - n_frames)))

        # Kernel 1: fused filterbank matmul + magnitude/power, (B, F, Tp).
        feats = conv_filterbank(frames, self.w_cat, n_bins=self.n_bins,
                                tile_t=tile_t, output_power=self.to_db)

        # MaxPool1d(max_p) over time (glue; identity for max_p == 1).
        if self.max_p > 1:
            Treal = (n_frames // self.max_p) * self.max_p
            n_out = Treal // self.max_p
            x = feats[:, :, :Treal].reshape(B, self.n_bins, n_out, self.max_p)
            feats = jnp.max(x, axis=-1)
            tile_t2 = _pick_tile(n_out)
            Tp2 = _round_up(n_out, tile_t2)
            feats = jnp.pad(feats, ((0, 0), (0, 0), (0, Tp2 - n_out)))
        else:
            n_out = n_frames
            tile_t2 = tile_t

        # Per-batch dB reference (tiny reduction over the real frames only),
        # fed to the elementwise kernel 2 as a (B,1,1) broadcast operand.
        if self.to_db:
            max_power = jnp.max(feats[:, :, :n_out], axis=(1, 2))
            ref_db = 10.0 * jnp.log10(jnp.maximum(max_power, self.amin ** 2))
        else:
            ref_db = jnp.zeros((B,), jnp.float32)
        ref_db = ref_db.astype(jnp.float32).reshape(B, 1, 1)

        # Kernel 2: power->dB (+[0,1] scaling) + eval-mode BatchNorm.
        if self.to_db or self.batch_norm:
            feats = post_proc(
                feats, ref_db, self.bn_scale, self.bn_shift,
                tile_t=tile_t2, amin=self.amin, top_db=self.top_db,
                to_db=self.to_db, db_to_prob=self.db_to_prob,
                batch_norm=self.batch_norm)

        return feats[:, :, :n_out]


# -----------------------------------------------------------------------------
# Pure-JAX reference (original sqrt-magnitude formulation, for a sanity check).
# -----------------------------------------------------------------------------
def reference_forward(mod, audio):
    audio = mod.pad_audio(audio)
    B, _, T = audio.shape
    K, pad = mod.kernel_width, mod.kernel_width // 2
    stride = mod.hop_length // mod.max_p
    padded = jnp.pad(audio[:, 0, :], ((0, 0), (pad, pad)))
    n_frames = (T + 2 * pad - K) // stride + 1
    idx = jnp.arange(n_frames)[:, None] * stride + jnp.arange(K)[None, :]
    frames = padded[:, idx]                                   # (B, Tf, K)
    w_real = mod.w_cat[:mod.n_bins]                           # (F, K)
    w_imag = mod.w_cat[mod.n_bins:]
    real = jnp.einsum('btk,fk->btf', frames, w_real)
    imag = jnp.einsum('btk,fk->btf', frames, w_imag)
    feats = jnp.sqrt(real * real + imag * imag)
    feats = jnp.transpose(feats, (0, 2, 1))                   # (B, F, Tf)
    if mod.max_p > 1:
        Tp = (feats.shape[-1] // mod.max_p) * mod.max_p
        feats = feats[..., :Tp].reshape(B, mod.n_bins, Tp // mod.max_p, mod.max_p)
        feats = jnp.max(feats, axis=-1)
    if mod.to_db:
        power = jnp.maximum(feats * feats, mod.amin ** 2)
        db = 10.0 * jnp.log10(power)
        ref_db = jnp.max(db, axis=(1, 2), keepdims=True)
        db = jnp.maximum(db - ref_db, -mod.top_db)
        feats = (db + mod.top_db) / mod.top_db if mod.db_to_prob else db
    if mod.batch_norm:
        feats = feats * mod.bn_scale[None] + mod.bn_shift[None]
    return feats


if __name__ == "__main__":
    key = jax.random.PRNGKey(0)
    k_audio, k_weights = jax.random.split(key)

    B, T = 2, 250                       # T deliberately not a hop multiple
    audio = jax.random.normal(k_audio, (B, 1, T), jnp.float32)  # (B x 1 x T)

    mod = LVQTPallas(hop_length=16, n_bins=32, kernel_width=32, max_p=1,
                     to_db=True, db_to_prob=True, batch_norm=True,
                     key=k_weights)

    forward = jax.jit(mod.__call__)
    out = jax.block_until_ready(forward(audio))

    ref = jax.block_until_ready(reference_forward(mod, audio))
    assert out.shape == (B, mod.n_bins, 17), out.shape
    assert jnp.allclose(out, ref, rtol=1e-3, atol=1e-3), \
        float(jnp.max(jnp.abs(out - ref)))

    print("KERNEL_OK")
</pallas_src>

<mosaic_0001>
module attributes {stable_mosaic.version = 11 : i64} {
  func.func @_conv_mag_kernel(%arg0: i32, %arg1: i32, %arg2: memref<1x32x128xf32, #tpu.memory_space<vmem>>, %arg3: memref<64x32xf32, #tpu.memory_space<vmem>>, %arg4: memref<1x32x128xf32, #tpu.memory_space<vmem>>) attributes {dimension_semantics = [#tpu.dimension_semantics<parallel>, #tpu.dimension_semantics<parallel>], iteration_bounds = array<i64: 2, 1>, scalar_prefetch = 0 : i64, scratch_operands = 0 : i64, tpu.core_type = #tpu.core_type<tc>, window_params = [{transform_indices = @transform_0, window_bounds = array<i64: 1, 32, 128>}, {pipeline_mode = #tpu.pipeline_mode<synchronous>, transform_indices = @transform_1, window_bounds = array<i64: 64, 32>}, {transform_indices = @transform_2, window_bounds = array<i64: 1, 32, 128>}]} {
    %c0 = arith.constant 0 : index
    %c0_0 = arith.constant 0 : index
    %c0_1 = arith.constant 0 : index
    %0 = vector.load %arg2[%c0, %c0_0, %c0_1] : memref<1x32x128xf32, #tpu.memory_space<vmem>>, vector<1x32x128xf32>
    %1 = vector.shape_cast %0 : vector<1x32x128xf32> to vector<32x128xf32>
    %c0_2 = arith.constant 0 : index
    %c0_3 = arith.constant 0 : index
    %2 = vector.load %arg3[%c0_2, %c0_3] : memref<64x32xf32, #tpu.memory_space<vmem>>, vector<64x32xf32>
    %cst = arith.constant dense<0.000000e+00> : vector<64x128xf32>
    %3 = tpu.matmul %2, %1, %cst {dimension_numbers = #tpu.dot_dimension_numbers<[1], [0], [0], [1], [0, 0, 1, 1], [], []>} : vector<64x32xf32>, vector<32x128xf32>, vector<64x128xf32> -> vector<64x128xf32>
    %4 = vector.extract_strided_slice %3 {offsets = [0, 0], sizes = [32, 128], strides = [1, 1]} : vector<64x128xf32> to vector<32x128xf32>
    %5 = vector.extract_strided_slice %3 {offsets = [32, 0], sizes = [32, 128], strides = [1, 1]} : vector<64x128xf32> to vector<32x128xf32>
    %6 = arith.mulf %4, %4 : vector<32x128xf32>
    %7 = arith.mulf %5, %5 : vector<32x128xf32>
    %8 = arith.addf %6, %7 : vector<32x128xf32>
    %c0_4 = arith.constant 0 : index
    %c0_5 = arith.constant 0 : index
    %c0_6 = arith.constant 0 : index
    %9 = vector.load %arg4[%c0_4, %c0_5, %c0_6] : memref<1x32x128xf32, #tpu.memory_space<vmem>>, vector<1x32x128xf32>
    %10 = vector.shape_cast %9 : vector<1x32x128xf32> to vector<32x128xf32>
    %11 = vector.shape_cast %8 : vector<32x128xf32> to vector<1x32x128xf32>
    tpu.vector_store %arg4[%c0_4, %c0_5, %c0_6], %11 {strides = array<i32>} : memref<1x32x128xf32, #tpu.memory_space<vmem>>, vector<1x32x128xf32>,
    return
  }
  func.func @transform_0(%arg0: i32, %arg1: i32) -> (i32, i32, i32) {
    %c0_i32 = arith.constant 0 : i32
    %c0_i32_0 = arith.constant 0 : i32
    return %arg0, %c0_i32, %arg1 : i32, i32, i32
  }
  func.func @transform_1(%arg0: i32, %arg1: i32) -> (i32, i32) {
    %c0_i32 = arith.constant 0 : i32
    %c0_i32_0 = arith.constant 0 : i32
    %c0_i32_1 = arith.constant 0 : i32
    return %c0_i32, %c0_i32_0 : i32, i32
  }
  func.func @transform_2(%arg0: i32, %arg1: i32) -> (i32, i32, i32) {
    %c0_i32 = arith.constant 0 : i32
    %c0_i32_0 = arith.constant 0 : i32
    return %arg0, %c0_i32, %arg1 : i32, i32, i32
  }
}

module attributes {stable_mosaic.version = 11 : i64} {
  func.func @_postproc_kernel(%arg0: i32, %arg1: i32, %arg2: memref<1x32x128xf32, #tpu.memory_space<vmem>>, %arg3: memref<1x1x1xf32, #tpu.memory_space<vmem>>, %arg4: memref<32x1xf32, #tpu.memory_space<vmem>>, %arg5: memref<32x1xf32, #tpu.memory_space<vmem>>, %arg6: memref<1x32x128xf32, #tpu.memory_space<vmem>>) attributes {dimension_semantics = [#tpu.dimension_semantics<parallel>, #tpu.dimension_semantics<parallel>], iteration_bounds = array<i64: 2, 1>, scalar_prefetch = 0 : i64, scratch_operands = 0 : i64, tpu.core_type = #tpu.core_type<tc>, window_params = [{transform_indices = @transform_0, window_bounds = array<i64: 1, 32, 128>}, {transform_indices = @transform_1, window_bounds = array<i64: 1, 1, 1>}, {pipeline_mode = #tpu.pipeline_mode<synchronous>, transform_indices = @transform_2, window_bounds = array<i64: 32, 1>}, {pipeline_mode = #tpu.pipeline_mode<synchronous>, transform_indices = @transform_3, window_bounds = array<i64: 32, 1>}, {transform_indices = @transform_4, window_bounds = array<i64: 1, 32, 128>}]} {
    %c0 = arith.constant 0 : index
    %c0_0 = arith.constant 0 : index
    %c0_1 = arith.constant 0 : index
    %0 = vector.load %arg2[%c0, %c0_0, %c0_1] : memref<1x32x128xf32, #tpu.memory_space<vmem>>, vector<1x32x128xf32>
    %1 = vector.shape_cast %0 : vector<1x32x128xf32> to vector<32x128xf32>
    %cst = arith.constant 9.99999968E-21 : f32
    %2 = vector.broadcast %cst : f32 to vector<32x128xf32>
    %3 = arith.maximumf %1, %2 : vector<32x128xf32>
    %4 = math.log %3 : vector<32x128xf32>
    %cst_2 = arith.constant 0.434294492 : f32
    %5 = vector.broadcast %cst_2 : f32 to vector<32x128xf32>
    %6 = arith.mulf %4, %5 : vector<32x128xf32>
    %cst_3 = arith.constant 1.000000e+01 : f32
    %7 = vector.broadcast %cst_3 : f32 to vector<32x128xf32>
    %8 = arith.mulf %7, %6 : vector<32x128xf32>
    %c0_4 = arith.constant 0 : index
    %c0_5 = arith.constant 0 : index
    %c0_6 = arith.constant 0 : index
    %9 = vector.load %arg3[%c0_4, %c0_5, %c0_6] : memref<1x1x1xf32, #tpu.memory_space<vmem>>, vector<1x1x1xf32>
    %10 = vector.shape_cast %9 : vector<1x1x1xf32> to vector<1x1xf32>
    %11 = vector.broadcast %10 : vector<1x1xf32> to vector<32x128xf32>
    %12 = arith.subf %8, %11 : vector<32x128xf32>
    %cst_7 = arith.constant -8.000000e+01 : f32
    %13 = vector.broadcast %cst_7 : f32 to vector<32x128xf32>
    %14 = arith.maximumf %12, %13 : vector<32x128xf32>
    %cst_8 = arith.constant 8.000000e+01 : f32
    %15 = vector.broadcast %cst_8 : f32 to vector<32x128xf32>
    %16 = arith.addf %14, %15 : vector<32x128xf32>
    %cst_9 = arith.constant 1.250000e-02 : f32
    %17 = vector.broadcast %cst_9 : f32 to vector<32x128xf32>
    %18 = arith.mulf %16, %17 : vector<32x128xf32>
    %c0_10 = arith.constant 0 : index
    %c0_11 = arith.constant 0 : index
    %19 = vector.load %arg4[%c0_10, %c0_11] : memref<32x1xf32, #tpu.memory_space<vmem>>, vector<32x1xf32>
    %20 = vector.broadcast %19 : vector<32x1xf32> to vector<32x128xf32>
    %21 = arith.mulf %18, %20 : vector<32x128xf32>
    %c0_12 = arith.constant 0 : index
    %c0_13 = arith.constant 0 : index
    %22 = vector.load %arg5[%c0_12, %c0_13] : memref<32x1xf32, #tpu.memory_space<vmem>>, vector<32x1xf32>
    %23 = vector.broadcast %22 : vector<32x1xf32> to vector<32x128xf32>
    %24 = arith.addf %21, %23 : vector<32x128xf32>
    %c0_14 = arith.constant 0 : index
    %c0_15 = arith.constant 0 : index
    %c0_16 = arith.constant 0 : index
    %25 = vector.load %arg6[%c0_14, %c0_15, %c0_16] : memref<1x32x128xf32, #tpu.memory_space<vmem>>, vector<1x32x128xf32>
    %26 = vector.shape_cast %25 : vector<1x32x128xf32> to vector<32x128xf32>
    %27 = vector.shape_cast %24 : vector<32x128xf32> to vector<1x32x128xf32>
    tpu.vector_store %arg6[%c0_14, %c0_15, %c0_16], %27 {strides = array<i32>} : memref<1x32x128xf32, #tpu.memory_space<vmem>>, vector<1x32x128xf32>,
    return
  }
  func.func @transform_0(%arg0: i32, %arg1: i32) -> (i32, i32, i32) {
    %c0_i32 = arith.constant 0 : i32
    %c0_i32_0 = arith.constant 0 : i32
    return %arg0, %c0_i32, %arg1 : i32, i32, i32
  }
  func.func @transform_1(%arg0: i32, %arg1: i32) -> (i32, i32, i32) {
    %c0_i32 = arith.constant 0 : i32
    %c0_i32_0 = arith.constant 0 : i32
    %c0_i32_1 = arith.constant 0 : i32
    return %arg0, %c0_i32, %c0_i32_0 : i32, i32, i32
  }
  func.func @transform_2(%arg0: i32, %arg1: i32) -> (i32, i32) {
    %c0_i32 = arith.constant 0 : i32
    %c0_i32_0 = arith.constant 0 : i32
    %c0_i32_1 = arith.constant 0 : i32
    return %c0_i32, %c0_i32_0 : i32, i32
  }
  func.func @transform_3(%arg0: i32, %arg1: i32) -> (i32, i32) {
    %c0_i32 = arith.constant 0 : i32
    %c0_i32_0 = arith.constant 0 : i32
    %c0_i32_1 = arith.constant 0 : i32
    return %c0_i32, %c0_i32_0 : i32, i32
  }
  func.func @transform_4(%arg0: i32, %arg1: i32) -> (i32, i32, i32) {
    %c0_i32 = arith.constant 0 : i32
    %c0_i32_0 = arith.constant 0 : i32
    return %arg0, %c0_i32, %arg1 : i32, i32, i32
  }
}

</mosaic_0001>

<bundles_post_ra>
// kernel: a_call__.2
= control target key start
LH: loop header
LB: loop body
LE: loop exit
PB: predicated region body
PF: predicated region fallthrough
CT: control target
= control target key end

     0   :  { %s448_s9 = smov 0   ;;  %s450_s10 = smov 0   ;;  %s520_s0 = inlined_call_operand.vmem [shape: f32[2,32,128], index: 0, kind: input, shape index: {}]   ;;  %s521_s1 = inlined_call_operand.vmem [shape: f32[64,32], index: 1, kind: input, shape index: {}]   ;;  %s522_s2 = inlined_call_operand.vmem [shape: f32[2,32,128], index: 2, kind: output, shape index: {}]  }
   0x1   :  { %s452_s11 = smov 0  }
   0x2 LB: > { %s24_s12 = sadd.s32 1, %s427_s10  ;;  %p356_p0 = scmp.ge.s32.totalorder %s431_s11, 1  ;;  %s431_s11 = sphi %s452_s11, %s12_s11   ;;  %s427_s10 = sphi %s450_s10, %s524_s10   ;;  %s423_s9 = sphi %s448_s9, %s523_s9  }
   0x3   : > { %p26_p1 = scmp.ge.s32.totalorder %s24_s12, 2  ;;  %p131_p2 = scmp.lt.s32.totalorder %s431_s11, 3 }
   0x5   : > { %s526_s12 = smov (%p26_p1, %s24_s12), 0  ;;  %p132_p3 = pnand %p356_p0, %p131_p2 }
   0x6   : > { %p159_p4 = scmp.lt.s32.totalorder (!%p132_p3), %s423_s9, 1 }
   0x7   : > { %135 = sbr.rel (%p132_p3) target bundleno = 169 (0xa9), region = 28 }
   0xc   : > { %s528_s9 = smov (!%p159_p4, %s423_s9), 1  ;;  %v183_v4 = vld [vmem:[%s521_s1 + $0x20] sm:$0xff]  ;;  %vm187_vm0 = vcmask 261120   ;;  %v185_v5 = vld [vmem:[%s521_s1 + $0x30] sm:$0xff]  ;;  %v184_v8 = vld [vmem:[%s521_s1 + $0x28] sm:$0xff] }
   0xd   : > { %s371_s13 = sshll.u32 %s528_s9, 5  ;;  %v179_v6 = vld [vmem:[%s521_s1] sm:$0xff]  ;;  %v181_v7 = vld [vmem:[%s521_s1 + $0x10] sm:$0xff]  ;;  %v186_v9 = vld [vmem:[%s521_s1 + $0x38] sm:$0xff] }
   0xe   : > { %s166_s16 = scalar_lea.vmem %s520_s0, %s371_s13  ;;  %v180_v10 = vld [vmem:[%s521_s1 + $0x8] sm:$0xff]  ;;  %v182_v11 = vld [vmem:[%s521_s1 + $0x18] sm:$0xff]  ;;  %s174_s7 = scalar_lea.vmem %s522_s2, %s371_s13 }
   0xf   : > { %v178_v0 = vld [vmem:[%s166_s16 + $0x18] sm:$0xff]  ;;  %v177_v1 = vld [vmem:[%s166_s16 + $0x10] sm:$0xff]  ;;  %v176_v2 = vld [vmem:[%s166_s16 + $0x8] sm:$0xff] }
  0x10   : > { %374 = vmatpush.msra.mxu2 %v178_v0  ;;  %375 = vmatpush.msra.mxu3 %v178_v0  ;;  %v175_v3 = vld [vmem:[%s166_s16] sm:$0xff] }
  0x11   : > { %224 = vmatpush.msra.mxu0 %v178_v0  ;;  %373 = vmatpush.msra.mxu1 %v178_v0 }
  0x12   : > { %377 = vmatpush.msra.mxu2 %v177_v1  ;;  %378 = vmatpush.msra.mxu3 %v177_v1 }
  0x13   : > { %225 = vmatpush.msra.mxu0 %v177_v1  ;;  %376 = vmatpush.msra.mxu1 %v177_v1 }
  0x14   : > { %380 = vmatpush.msra.mxu2 %v176_v2  ;;  %381 = vmatpush.msra.mxu3 %v176_v2 }
  0x15   : > { %226 = vmatpush.msra.mxu0 %v176_v2  ;;  %379 = vmatpush.msra.mxu1 %v176_v2 }
  0x16   : > { %383 = vmatpush.msra.mxu2 %v175_v3  ;;  %384 = vmatpush.msra.mxu3 %v175_v3 }
  0x17   : > { %365 = vmatmul.msk.f32.vlgmr.msra.gmra.mxu2 %vm187_vm0, %v183_v4  ;;  %367 = vmatmul.msk.f32.vlgmr.msra.gmra.mxu3 %vm187_vm0, %v185_v5 }
  0x18   : > { %227 = vmatpush.msra.mxu0 %v175_v3  ;;  %382 = vmatpush.msra.mxu1 %v175_v3 }
  0x19   : > { %361 = vmatmul.msk.f32.vlgmr.msra.gmra.mxu0 %vm187_vm0, %v179_v6  ;;  %363 = vmatmul.msk.f32.vlgmr.msra.gmra.mxu1 %vm187_vm0, %v181_v7 }
  0x1f   : > { %366 = vmatmul.msk.f32.gmra.mxu2 %vm187_vm0, %v184_v8  ;;  %368 = vmatmul.msk.f32.gmra.mxu3 %vm187_vm0, %v186_v9 }
  0x21   : > { %362 = vmatmul.msk.f32.gmra.mxu0 %vm187_vm0, %v180_v10  ;;  %364 = vmatmul.msk.f32.gmra.mxu1 %vm187_vm0, %v182_v11 }
  0x96   : > { %v229_v12 = vpop.f32.mrf.mxu0  ;;  %v235_v13 = vpop.f32.mrf.mxu1 }
  0x97   : > { %v253_v14 = vmul.f32 %v229_v12, %v229_v12  ;;  %v255_v15 = vmul.f32 %v235_v13, %v235_v13 }
  0x9a   : > { %v241_v16 = vpop.f32.mrf.mxu2  ;;  %v247_v17 = vpop.f32.mrf.mxu3 }
  0x9b   : > { %v257_v18 = vmul.f32 %v241_v16, %v241_v16  ;;  %v259_v19 = vmul.f32 %v247_v17, %v247_v17 }
  0x9d   : > { %v261_v20 = vadd.f32 %v257_v18, %v253_v14  ;;  %v263_v21 = vadd.f32 %v259_v19, %v255_v15 }
  0x9e   : > { %v232_v22 = vpop.f32.mrf.mxu0  ;;  %v238_v23 = vpop.f32.mrf.mxu1 }
  0x9f   : > { %265 = vst [vmem:[%s174_s7] sm:$0xff] %v261_v20  ;;  %v254_v24 = vmul.f32 %v232_v22, %v232_v22  ;;  %v256_v25 = vmul.f32 %v238_v23, %v238_v23 }
  0xa0   : > { %267 = vst [vmem:[%s174_s7 + $0x10] sm:$0xff] %v263_v21 }
  0xa2   : > { %v244_v26 = vpop.f32.mrf.mxu2  ;;  %v250_v27 = vpop.f32.mrf.mxu3 }
  0xa3   : > { %v258_v28 = vmul.f32 %v244_v26, %v244_v26  ;;  %v260_v29 = vmul.f32 %v250_v27, %v250_v27 }
  0xa5   : > { %v262_v30 = vadd.f32 %v258_v28, %v254_v24  ;;  %v264_v31 = vadd.f32 %v260_v29, %v256_v25 }
  0xa7   : > { %266 = vst [vmem:[%s174_s7 + $0x8] sm:$0xff] %v262_v30 }
  0xa8   : > { %268 = vst [vmem:[%s174_s7 + $0x18] sm:$0xff] %v264_v31 }
  0xa9 PF: > { %s12_s11 = sadd.s32 1, %s431_s11   ;;  %s523_s9 = smov %s427_s10 }
  0xaa   : > { %p9_p5 = scmp.ge.s32.totalorder %s12_s11, 4   ;;  %s524_s10 = smov %s526_s12 }
  0xac   :  { %11 = sbr.rel (!%p9_p5) target bundleno = 2 (0x2), region = 58 }

// kernel: a_call__.3
= control target key start
LH: loop header
LB: loop body
LE: loop exit
PB: predicated region body
PF: predicated region fallthrough
CT: control target
= control target key end

     0   :  { %s542_s15 = smov 0   ;;  %s544_s16 = smov 0   ;;  %s610_s0 = inlined_call_operand.vmem [shape: f32[2,32,128], index: 0, kind: input, shape index: {}]   ;;  %s611_s1 = inlined_call_operand.vmem [shape: f32[2,1,1], index: 1, kind: input, shape index: {}]   ;;  %s612_s2 = inlined_call_operand.vmem [shape: f32[32,1], index: 2, kind: input, shape index: {}]   ;;  %s613_s3 = inlined_call_operand.vmem [shape: f32[32,1], index: 3, kind: input, shape index: {}]   ;;  %s614_s4 = inlined_call_operand.vmem [shape: f32[2,32,128], index: 4, kind: output, shape index: {}]  }
   0x1   :  { %s546_s17 = smov 0  }
   0x2 LB: > { %s26_s18 = sadd.s32 1, %s510_s16  ;;  %p446_p0 = scmp.ge.s32.totalorder %s514_s17, 1  ;;  %s514_s17 = sphi %s546_s17, %s14_s17   ;;  %s510_s16 = sphi %s544_s16, %s616_s16   ;;  %s506_s15 = sphi %s542_s15, %s615_s15  }
   0x3   : > { %p28_p1 = scmp.ge.s32.totalorder %s26_s18, 2  ;;  %p189_p2 = scmp.lt.s32.totalorder %s514_s17, 3 }
   0x5   : > { %s618_s18 = smov (%p28_p1, %s26_s18), 0  ;;  %p190_p3 = pnand %p446_p0, %p189_p2 }
   0x6   : > { %p224_p4 = scmp.lt.s32.totalorder (!%p190_p3), %s506_s15, 1 }
   0x7   : > { %193 = sbr.rel (%p190_p3) target bundleno = 149 (0x95), region = 36 }
   0xc   : > { %v291_v0 = vld [vmem:[%s612_s2 + $0x8] sm:$0xff]  ;;  %v293_v1 = vld [vmem:[%s612_s2 + $0x18] sm:$0xff]  ;;  %v516_v2 = vmov 0   ;;  %s620_s15 = smov (!%p224_p4, %s506_s15), 1  ;;  %v292_v4 = vld [vmem:[%s612_s2 + $0x10] sm:$0xff] }
   0xd   : > { %481 = vset.pattern.permute.xlu1 %v516_v2  ;;  %480 = vset.pattern.permute.xlu0 %v516_v2  ;;  %s234_s25 = scalar_lea.vmem %s611_s1, %s620_s15  ;;  %v318_v5 = vld [vmem:[%s613_s3] sm:$0xff]  ;;  %v320_v7 = vld [vmem:[%s613_s3 + $0x10] sm:$0xff]  ;;  %v321_v8 = vld [vmem:[%s613_s3 + $0x18] sm:$0xff]  ;;  %s453_s12 = sshll.u32 %s620_s15, 5 }
   0xe   : > { %301 = vperm.xlu1 %481, %v291_v0   ;;  %482 = vset.pattern.permute.xlu2 %v516_v2  ;;  %v483_v3 = vld [vmem:[%s234_s25] ss:$0 sm:$0xff]  ;;  %v319_v9 = vld [vmem:[%s613_s3 + $0x8] sm:$0xff]  ;;  %s231_s19 = scalar_lea.vmem %s610_s0, %s453_s12  ;;  %s242_s22 = scalar_lea.vmem %s614_s4, %s453_s12 }
   0xf   : > { %311 = vperm.xlu2 %482, %v293_v1   ;;  %271 = vperm.xlu0 %480, %v483_v3   ;;  %v290_v6 = vld [vmem:[%s612_s2] sm:$0xff]  ;;  %v244_v10 = vld [vmem:[%s231_s19 + $0x8] sm:$0xff]  ;;  %v246_v11 = vld [vmem:[%s231_s19 + $0x18] sm:$0xff] }
  0x10   : > { %v245_v12 = vld [vmem:[%s231_s19 + $0x10] sm:$0xff]  ;;  %v248_v13 = vmax.f32 %v244_v10, 1e-20  ;;  %v243_v14 = vld [vmem:[%s231_s19] sm:$0xff]  ;;  %v250_v15 = vmax.f32 %v246_v11, 1e-20 }
  0x11   : > { %v249_v16 = vmax.f32 %v245_v12, 1e-20  ;;  %v247_v17 = vmax.f32 %v243_v14, 1e-20 }
  0x12   : > { %484 = vlog2.f32 %v248_v13 }
  0x13   : > { %486 = vlog2.f32 %v250_v15 }
  0x14   : > { %488 = vlog2.f32 %v249_v16 }
  0x15   : > { %490 = vlog2.f32 %v247_v17 }
  0x16   : > { %306 = vperm.xlu1 %481, %v292_v4  }
  0x17   : > { %324 = vperm.xlu2 %482, %v318_v5   ;;  %296 = vperm.xlu0 %480, %v290_v6  }
  0x18   : > { %v485_v18 = vpop.eup %484 }
  0x19   : > { %v487_v19 = vpop.eup %486  ;;  %v254_v22 = vmul.f32 0.6931472, %v485_v18 }
  0x1a   : > { %v489_v20 = vpop.eup %488  ;;  %v258_v23 = vmul.f32 0.6931472, %v487_v19 }
  0x1b   : > { %v491_v21 = vpop.eup %490  ;;  %v256_v24 = vmul.f32 0.6931472, %v489_v20  ;;  %v260_v27 = vmul.f32 0.4342945, %v254_v22 }
  0x1c   : > { %v252_v25 = vmul.f32 0.6931472, %v491_v21  ;;  %v262_v28 = vmul.f32 0.4342945, %v258_v23 }
  0x1d   : > { %v261_v29 = vmul.f32 0.4342945, %v256_v24  ;;  %v264_v32 = vmul.f32 10.0, %v260_v27 }
  0x1e   : > { %334 = vperm.xlu1 %481, %v320_v7   ;;  %v259_v30 = vmul.f32 0.4342945, %v252_v25  ;;  %v266_v33 = vmul.f32 10.0, %v262_v28 }
  0x1f   : > { %339 = vperm.xlu2 %482, %v321_v8   ;;  %329 = vperm.xlu0 %480, %v319_v9   ;;  %v265_v34 = vmul.f32 10.0, %v261_v29 }
  0x20   : > { %v263_v35 = vmul.f32 10.0, %v259_v30 }
  0x69   : > { %v312_v26 = vpop.permute.xlu2 %311 }
  0x71   : > { %v325_v36 = vpop.permute.xlu2 %324 }
  0x79   : > { %v340_v58 = vpop.permute.xlu2 %339 }
  0x80   : > { %v302_v31 = vpop.permute.xlu1 %301 }
  0x81   : > { %v272_v37 = vpop.permute.xlu0 %271 }
  0x82   : > { %v275_v38 = vsub.f32 %v264_v32, %v272_v37  ;;  %v277_v39 = vsub.f32 %v266_v33, %v272_v37  ;;  %v276_v40 = vsub.f32 %v265_v34, %v272_v37  ;;  %v274_v41 = vsub.f32 %v263_v35, %v272_v37 }
  0x84   : > { %v281_v42 = vmax.f32 %v277_v39, -80.0  ;;  %v280_v44 = vmax.f32 %v276_v40, -80.0  ;;  %v278_v45 = vmax.f32 %v274_v41, -80.0  ;;  %v279_v46 = vmax.f32 %v275_v38, -80.0 }
  0x86   : > { %v285_v47 = vadd.f32 80.0, %v281_v42  ;;  %v284_v48 = vadd.f32 80.0, %v280_v44  ;;  %v282_v49 = vadd.f32 80.0, %v278_v45  ;;  %v283_v50 = vadd.f32 80.0, %v279_v46 }
  0x88   : > { %v307_v43 = vpop.permute.xlu1 %306  ;;  %v289_v51 = vmul.f32 0.0125, %v285_v47  ;;  %v288_v52 = vmul.f32 0.0125, %v284_v48  ;;  %v286_v53 = vmul.f32 0.0125, %v282_v49 }
  0x89   : > { %v297_v54 = vpop.permute.xlu0 %296  ;;  %v287_v62 = vmul.f32 0.0125, %v283_v50 }
  0x8a   : > { %v317_v55 = vmul.f32 %v312_v26, %v289_v51  ;;  %v316_v56 = vmul.f32 %v307_v43, %v288_v52  ;;  %v314_v57 = vmul.f32 %v297_v54, %v286_v53 }
  0x8b   : > { %v315_v0 = vmul.f32 %v302_v31, %v287_v62 }
  0x8c   : > { %v345_v59 = vadd.f32 %v340_v58, %v317_v55  ;;  %v342_v60 = vadd.f32 %v325_v36, %v314_v57 }
  0x8e   : > { %349 = vst [vmem:[%s242_s22 + $0x18] sm:$0xff] %v345_v59 }
  0x8f   : > { %346 = vst [vmem:[%s242_s22] sm:$0xff] %v342_v60 }
  0x90   : > { %v335_v61 = vpop.permute.xlu1 %334 }
  0x91   : > { %v344_v63 = vadd.f32 %v335_v61, %v316_v56  ;;  %v330_v1 = vpop.permute.xlu0 %329 }
  0x92   : > { %v343_v2 = vadd.f32 %v330_v1, %v315_v0 }
  0x93   : > { %348 = vst [vmem:[%s242_s22 + $0x10] sm:$0xff] %v344_v63 }
  0x94   : > { %347 = vst [vmem:[%s242_s22 + $0x8] sm:$0xff] %v343_v2 }
  0x95 PF: > { %s14_s17 = sadd.s32 1, %s514_s17   ;;  %s615_s15 = smov %s510_s16 }
  0x96   : > { %p11_p5 = scmp.ge.s32.totalorder %s14_s17, 4   ;;  %s616_s16 = smov %s618_s18 }
  0x98   :  { %13 = sbr.rel (!%p11_p5) target bundleno = 2 (0x2), region = 69 }

</bundles_post_ra>
